<compile_context>
chip_gen: v7x
topology: tpu7x:2x2x1
jax: 0.10.0
libtpu: 0.0.40
codegen_flags: <defaults>
</compile_context>

<pallas_src>
import jax
import jax.numpy as jnp
from jax.experimental import pallas as pl
from jax.experimental.pallas import tpu as pltpu


# ----------------------------- Pallas kernel --------------------------------

def make_dti_kernel(HC, HP, HCLS, SEG):
    """Build the fused per-graph-tile forward kernel, closing over static sizes."""

    def dti_kernel(x_ref, adj_ref, invdeg_ref, prot_ref, invcnt_ref,
                   wc_ref, wp_ref, w1_ref, w2_ref, b_ref, out_ref):
        GB, MAXN, FIN = x_ref.shape

        # f32 bias slab, each segment starts at a 128-lane-aligned offset: [bc | bp | b1 | b2]
        bc = b_ref[:, 0:HC]                                   # (1, HC)
        bp = b_ref[:, SEG:SEG + HP]                           # (1, HP)
        b1 = b_ref[:, 2 * SEG:2 * SEG + HCLS]                 # (1, HCLS)
        b2 = b_ref[:, 3 * SEG:3 * SEG + 1]                    # (1, 1)

        invdeg = invdeg_ref[...]                              # (GB, MAXN, 1) f32

        # ---- compoundNN: GCN on GB independent graph blocks (block-diagonal adj) ----
        ax = jnp.einsum('gnm,gmf->gnf', adj_ref[...], x_ref[...],
                        preferred_element_type=jnp.float32)   # (GB, MAXN, FIN), f32 acc
        ax = ax * invdeg                                      # D^-1 (A+I) X, f32 normalization
        h = (jnp.dot(ax.reshape(GB * MAXN, FIN).astype(jnp.bfloat16), wc_ref[...],
                     preferred_element_type=jnp.float32)
             .reshape(GB, MAXN, HC) + bc)                     # (GB, MAXN, HC)
        h = jnp.maximum(h, 0.0)                               # TODO(synk): bf16 elementwise on v6e/v7x

        # mean pool over valid nodes: padding rows have invdeg == 0 (f32 segment mean,
        # no dense [B,N]@[N,HC] pool matmul)
        valid = invdeg > 0.0                                  # (GB, MAXN, 1)
        comp = jnp.sum(jnp.where(valid, h, 0.0), axis=1) * invcnt_ref[...]   # (GB, HC) f32

        # ---- proteinNN: dense + ReLU ----
        prot = jnp.dot(prot_ref[...], wp_ref[...],
                       preferred_element_type=jnp.float32) + bp
        prot = jnp.maximum(prot, 0.0)                         # (GB, HP)

        # ---- classifier: concat(comp, prot) @ W1 via split of the packed weight ----
        h1 = (jnp.dot(comp.astype(jnp.bfloat16), w1_ref[0:HC, :],
                      preferred_element_type=jnp.float32)
              + jnp.dot(prot.astype(jnp.bfloat16), w1_ref[HC:HC + HP, :],
                        preferred_element_type=jnp.float32)
              + b1)
        h1 = jnp.maximum(h1, 0.0)                             # (GB, HCLS)

        # final 1-logit projection: VPU multiply + lane reduce (no 1-column MXU matmul).
        # Output per tile is only GB scalars (GB*4 bytes) -> store traffic is negligible;
        # the large intermediates (h, h1) never leave vregs.
        logits = jnp.sum(h1 * w2_ref[...], axis=-1, keepdims=True) + b2      # (GB, 1)
        out_ref[...] = logits.astype(out_ref.dtype)

    return dti_kernel


def dti_forward(x_blk, adj_raw, invdeg, invcnt, protein, params, *, graphs_per_tile=8):
    """Fused DTI forward over per-graph dense blocks. Returns logits [B, 1] (module semantics)."""
    B, MAX_N, FIN = x_blk.shape
    _, DP = protein.shape
    HC = params["wc"].shape[1]
    HP = params["wp"].shape[1]
    HCLS = params["b1"].shape[1]
    GB = graphs_per_tile
    assert B % GB == 0, "pad the graph batch to a multiple of graphs_per_tile"
    assert GB % 8 == 0 and MAX_N % 8 == 0, "sublane (8-row) alignment of per-tile blocks"
    assert HC % 16 == 0 and HP % 16 == 0, "bf16 sublane packing alignment for the W1 split"
    NT = B // GB

    # bf16 for MXU "data" operands (halves DMA bytes, 2x MXU rate on v6e/v7x);
    # 1/deg, 1/count, bias adds, ReLU and the final reduce stay in f32.
    x_b = x_blk.astype(jnp.bfloat16)
    adj_b = adj_raw.astype(jnp.bfloat16)          # unnormalized (A + I) blocks
    prot_b = protein.astype(jnp.bfloat16)
    invdeg_f = invdeg.astype(jnp.float32)         # (B, MAX_N, 1)
    invcnt_f = invcnt.astype(jnp.float32)         # (B, 1)
    wc_b = params["wc"].astype(jnp.bfloat16)
    wp_b = params["wp"].astype(jnp.bfloat16)
    w1_b = jnp.concatenate([params["w1c"], params["w1p"]], axis=0).astype(jnp.bfloat16)
    w2_row = params["w2"].reshape(1, HCLS).astype(jnp.float32)

    # all biases packed into one f32 slab; each segment starts 128-lane aligned
    SEG = 128 * pl.cdiv(max(HC, HP, HCLS), 128)
    b_slab = jnp.zeros((1, 4 * SEG), jnp.float32)
    b_slab = b_slab.at[:, 0:HC].set(params["bc"])
    b_slab = b_slab.at[:, SEG:SEG + HP].set(params["bp"])
    b_slab = b_slab.at[:, 2 * SEG:2 * SEG + HCLS].set(params["b1"])
    b_slab = b_slab.at[:, 3 * SEG:3 * SEG + 1].set(params["b2"])

    operands = (x_b, adj_b, invdeg_f, prot_b, invcnt_f, wc_b, wp_b, w1_b, w2_row, b_slab)

    # per-graph-tile blocks (streamed + double-buffered by the Pallas pipeline)
    data_specs = [
        pl.BlockSpec((GB, MAX_N, FIN), lambda t: (t, 0, 0)),      # x
        pl.BlockSpec((GB, MAX_N, MAX_N), lambda t: (t, 0, 0)),    # adjacency block
        pl.BlockSpec((GB, MAX_N, 1), lambda t: (t, 0, 0)),        # 1/deg (f32)
        pl.BlockSpec((GB, DP), lambda t: (t, 0)),                 # protein
        pl.BlockSpec((GB, 1), lambda t: (t, 0)),                  # 1/count (f32)
    ]
    # weights: constant index_map -> VMEM-resident across all grid steps (no re-DMA)
    weight_specs = [
        pl.BlockSpec((FIN, HC), lambda t: (0, 0)),
        pl.BlockSpec((DP, HP), lambda t: (0, 0)),
        pl.BlockSpec((HC + HP, HCLS), lambda t: (0, 0)),
        pl.BlockSpec((1, HCLS), lambda t: (0, 0)),
        pl.BlockSpec((1, 4 * SEG), lambda t: (0, 0)),
    ]
    out_spec = pl.BlockSpec((GB, 1), lambda t: (t, 0))

    flops = (2 * B * MAX_N * MAX_N * FIN + 2 * B * MAX_N * FIN * HC + B * MAX_N * HC
             + 2 * B * DP * HP + 2 * B * (HC + HP) * HCLS + 2 * B * HCLS)
    bytes_accessed = sum(int(a.size) * a.dtype.itemsize for a in operands) + B * 4

    out = pl.pallas_call(
        make_dti_kernel(HC, HP, HCLS, SEG),
        out_shape=jax.ShapeDtypeStruct((B, 1), jnp.float32),
        grid_spec=pltpu.PrefetchScalarGridSpec(
            num_scalar_prefetch=0,
            grid=(NT,),
            in_specs=data_specs + weight_specs,
            out_specs=out_spec,
        ),
        compiler_params=pltpu.CompilerParams(
            # graph tiles are independent -> shard across v7x's 2 TensorCores
            dimension_semantics=("parallel",),
            # modest explicit budget; at production tile sizes budget per generation
            # (<= ~48 MiB live on v7x, up to ~96-112 MiB on v5e/v6e)
            vmem_limit_bytes=32 * 1024 * 1024,
        ),
        cost_estimate=pl.CostEstimate(flops=flops, transcendentals=0,
                                      bytes_accessed=bytes_accessed),
    )(*operands)
    return out


# ------------------------------ JAX glue -------------------------------------

def build_graph_blocks(x, edge_index, edge_attr, batch, num_graphs, max_nodes):
    """Convert a PyG-style flat graph batch into per-graph dense blocks.

    Exploits the block-diagonal structure of batched molecular adjacencies:
    storage / compute is num_graphs * max_nodes^2 instead of N_total^2, and
    off-diagonal zero blocks never reach the kernel.  Row-normalization weights
    (1/deg) and mean-pool weights (1/count) are returned separately in f32.
    """
    n_total, fin = x.shape
    counts = jnp.zeros((num_graphs,), jnp.int32).at[batch].add(1)
    starts = jnp.concatenate([jnp.zeros((1,), jnp.int32), jnp.cumsum(counts)[:-1]])
    local = jnp.arange(n_total, dtype=jnp.int32) - starts[batch]

    x_blk = jnp.zeros((num_graphs, max_nodes, fin), jnp.float32).at[batch, local].set(x)

    src, dst = edge_index[0], edge_index[1]
    ew = jnp.abs(edge_attr).mean(axis=-1)                      # scalar edge weight
    g = batch[src]
    adj = jnp.zeros((num_graphs, max_nodes, max_nodes), jnp.float32)
    adj = adj.at[g, local[src], local[dst]].add(ew)

    node_iota = jnp.arange(max_nodes, dtype=jnp.int32)[None, :]
    valid = node_iota < counts[:, None]                        # (B, max_nodes) valid-node mask
    adj = adj + jnp.eye(max_nodes, dtype=jnp.float32)[None] * valid[:, :, None].astype(jnp.float32)

    deg = adj.sum(axis=-1, keepdims=True)                      # (B, max_nodes, 1)
    invdeg = jnp.where(deg > 0, 1.0 / jnp.maximum(deg, 1e-6), 0.0)
    invcnt = (1.0 / jnp.maximum(counts, 1)).astype(jnp.float32)[:, None]   # (B, 1)
    return x_blk, adj, invdeg, invcnt, valid


def init_params(key, fin, hc, dp, hp, hcls):
    ks = jax.random.split(key, 9)

    def dense(k, i, o):
        return jax.random.normal(k, (i, o), jnp.float32) * (1.0 / jnp.sqrt(i))

    def bias(k, o):
        return 0.1 * jax.random.normal(k, (1, o), jnp.float32)

    return {
        "wc": dense(ks[0], fin, hc), "bc": bias(ks[1], hc),
        "wp": dense(ks[2], dp, hp), "bp": bias(ks[3], hp),
        "w1c": dense(ks[4], hc, hcls),
        "w1p": dense(ks[5], hp, hcls), "b1": bias(ks[6], hcls),
        "w2": dense(ks[7], hcls, 1), "b2": bias(ks[8], 1),
    }


# -------------------------------- demo ---------------------------------------

if __name__ == "__main__":
    key = jax.random.PRNGKey(0)
    k_x, k_e, k_p, k_w = jax.random.split(key, 4)

    # Synthetic batch of 16 molecular ring graphs (alternating 8 / 6 nodes, so the
    # valid-node masking and padding paths are exercised) + 16 protein vectors.
    B, MAX_N, FIN, EA, DP = 16, 8, 4, 3, 16
    HC, HP, HCLS = 32, 32, 32
    GB = 8                                     # graphs per grid tile -> grid = (2,)

    sizes = [8 if gi % 2 == 0 else 6 for gi in range(B)]
    batch_ids, src_l, dst_l = [], [], []
    off = 0
    for gi, n in enumerate(sizes):
        batch_ids += [gi] * n
        for v in range(n):                     # bidirectional ring edges
            src_l += [off + v, off + (v + 1) % n]
            dst_l += [off + (v + 1) % n, off + v]
        off += n
    N = off
    batch = jnp.array(batch_ids, jnp.int32)                       # node -> graph id
    edge_index = jnp.array([src_l, dst_l], jnp.int32)             # [2, E]
    E = edge_index.shape[1]

    x_nodes = jax.random.normal(k_x, (N, FIN), jnp.float32)       # node features
    edge_attr = jax.random.normal(k_e, (E, EA), jnp.float32)
    protein = jax.random.normal(k_p, (B, DP), jnp.float32)

    x_blk, adj_raw, invdeg, invcnt, valid = build_graph_blocks(
        x_nodes, edge_index, edge_attr, batch, B, MAX_N)
    params = init_params(k_w, FIN, HC, DP, HP, HCLS)

    out = dti_forward(x_blk, adj_raw, invdeg, invcnt, protein, params, graphs_per_tile=GB)
    out = jax.block_until_ready(out)
    assert out.shape == (B, 1) and out.dtype == jnp.float32

    # pure-JAX f32 reference (kernel uses bf16 MXU operands, so loose tolerance)
    adj_norm = adj_raw * invdeg                                        # D^-1 (A+I), f32
    ax_ref = jnp.einsum('gnm,gmf->gnf', adj_norm, x_blk)
    h_ref = jnp.maximum(jnp.einsum('gnf,fh->gnh', ax_ref, params["wc"]) + params["bc"], 0.0)
    comp_ref = jnp.where(valid[:, :, None], h_ref, 0.0).sum(axis=1) * invcnt
    prot_ref = jnp.maximum(protein @ params["wp"] + params["bp"], 0.0)
    h1_ref = jnp.maximum(comp_ref @ params["w1c"] + prot_ref @ params["w1p"] + params["b1"], 0.0)
    ref = h1_ref @ params["w2"] + params["b2"]
    assert jnp.allclose(out, ref, atol=5e-2, rtol=5e-2), (out, ref)

    print("KERNEL_OK")
</pallas_src>

<mosaic_0001>
module attributes {stable_mosaic.version = 11 : i64} {
  func.func @dti_kernel(%arg0: i32, %arg1: memref<8x8x4xbf16, #tpu.memory_space<vmem>>, %arg2: memref<8x8x8xbf16, #tpu.memory_space<vmem>>, %arg3: memref<8x8x1xf32, #tpu.memory_space<vmem>>, %arg4: memref<8x16xbf16, #tpu.memory_space<vmem>>, %arg5: memref<8x1xf32, #tpu.memory_space<vmem>>, %arg6: memref<4x32xbf16, #tpu.memory_space<vmem>>, %arg7: memref<16x32xbf16, #tpu.memory_space<vmem>>, %arg8: memref<64x32xbf16, #tpu.memory_space<vmem>>, %arg9: memref<1x32xf32, #tpu.memory_space<vmem>>, %arg10: memref<1x512xf32, #tpu.memory_space<vmem>>, %arg11: memref<8x1xf32, #tpu.memory_space<vmem>>) attributes {dimension_semantics = [#tpu.dimension_semantics<parallel>], iteration_bounds = array<i64: 2>, scalar_prefetch = 0 : i64, scratch_operands = 0 : i64, tpu.core_type = #tpu.core_type<tc>, window_params = [{transform_indices = @transform_0, window_bounds = array<i64: 8, 8, 4>}, {transform_indices = @transform_1, window_bounds = array<i64: 8, 8, 8>}, {transform_indices = @transform_2, window_bounds = array<i64: 8, 8, 1>}, {transform_indices = @transform_3, window_bounds = array<i64: 8, 16>}, {transform_indices = @transform_4, window_bounds = array<i64: 8, 1>}, {pipeline_mode = #tpu.pipeline_mode<synchronous>, transform_indices = @transform_5, window_bounds = array<i64: 4, 32>}, {pipeline_mode = #tpu.pipeline_mode<synchronous>, transform_indices = @transform_6, window_bounds = array<i64: 16, 32>}, {pipeline_mode = #tpu.pipeline_mode<synchronous>, transform_indices = @transform_7, window_bounds = array<i64: 64, 32>}, {pipeline_mode = #tpu.pipeline_mode<synchronous>, transform_indices = @transform_8, window_bounds = array<i64: 1, 32>}, {pipeline_mode = #tpu.pipeline_mode<synchronous>, transform_indices = @transform_9, window_bounds = array<i64: 1, 512>}, {transform_indices = @transform_10, window_bounds = array<i64: 8, 1>}]} {
    %c0 = arith.constant 0 : index
    %c0_0 = arith.constant 0 : index
    %0 = vector.load %arg10[%c0, %c0_0] : memref<1x512xf32, #tpu.memory_space<vmem>>, vector<1x32xf32>
    %c0_1 = arith.constant 0 : index
    %c128 = arith.constant 128 : index
    %1 = vector.load %arg10[%c0_1, %c128] : memref<1x512xf32, #tpu.memory_space<vmem>>, vector<1x32xf32>
    %c0_2 = arith.constant 0 : index
    %c256 = arith.constant 256 : index
    %2 = vector.load %arg10[%c0_2, %c256] : memref<1x512xf32, #tpu.memory_space<vmem>>, vector<1x32xf32>
    %c0_3 = arith.constant 0 : index
    %c384 = arith.constant 384 : index
    %3 = vector.load %arg10[%c0_3, %c384] : memref<1x512xf32, #tpu.memory_space<vmem>>, vector<1x1xf32>
    %c0_4 = arith.constant 0 : index
    %c0_5 = arith.constant 0 : index
    %c0_6 = arith.constant 0 : index
    %4 = vector.load %arg3[%c0_4, %c0_5, %c0_6] : memref<8x8x1xf32, #tpu.memory_space<vmem>>, vector<8x8x1xf32>
    %c0_7 = arith.constant 0 : index
    %c0_8 = arith.constant 0 : index
    %c0_9 = arith.constant 0 : index
    %5 = vector.load %arg2[%c0_7, %c0_8, %c0_9] : memref<8x8x8xbf16, #tpu.memory_space<vmem>>, vector<8x8x8xbf16>
    %c0_10 = arith.constant 0 : index
    %c0_11 = arith.constant 0 : index
    %c0_12 = arith.constant 0 : index
    %6 = vector.load %arg1[%c0_10, %c0_11, %c0_12] : memref<8x8x4xbf16, #tpu.memory_space<vmem>>, vector<8x8x4xbf16>
    "tpu.trace_start"() <{level = 10 : i32, message = "gnm,gmf->gnf"}> : () -> ()
    %cst = arith.constant dense<0.000000e+00> : vector<8x8x4xf32>
    %7 = tpu.matmul %5, %6, %cst {dimension_numbers = #tpu.dot_dimension_numbers<[2], [1], [1], [2], [0, 0, 0, 1, 1, 2], [0], [0]>} : vector<8x8x8xbf16>, vector<8x8x4xbf16>, vector<8x8x4xf32> -> vector<8x8x4xf32>
    "tpu.trace_stop"() : () -> ()
    %8 = vector.broadcast %4 : vector<8x8x1xf32> to vector<8x8x4xf32>
    %9 = arith.mulf %7, %8 : vector<8x8x4xf32>
    %10 = vector.shape_cast %9 : vector<8x8x4xf32> to vector<64x4xf32>
    %11 = arith.truncf %10 : vector<64x4xf32> to vector<64x4xbf16>
    %c0_13 = arith.constant 0 : index
    %c0_14 = arith.constant 0 : index
    %12 = vector.load %arg6[%c0_13, %c0_14] : memref<4x32xbf16, #tpu.memory_space<vmem>>, vector<4x32xbf16>
    %cst_15 = arith.constant dense<0.000000e+00> : vector<64x32xf32>
    %13 = tpu.matmul %11, %12, %cst_15 {dimension_numbers = #tpu.dot_dimension_numbers<[1], [0], [0], [1], [0, 0, 1, 1], [], []>} : vector<64x4xbf16>, vector<4x32xbf16>, vector<64x32xf32> -> vector<64x32xf32>
    %14 = vector.shape_cast %13 : vector<64x32xf32> to vector<8x8x32xf32>
    %15 = vector.shape_cast %0 : vector<1x32xf32> to vector<1x1x32xf32>
    %16 = vector.broadcast %15 : vector<1x1x32xf32> to vector<8x8x32xf32>
    %17 = arith.addf %14, %16 : vector<8x8x32xf32>
    %cst_16 = arith.constant 0.000000e+00 : f32
    %18 = vector.broadcast %cst_16 : f32 to vector<8x8x32xf32>
    %19 = arith.maximumf %17, %18 : vector<8x8x32xf32>
    %cst_17 = arith.constant 0.000000e+00 : f32
    %20 = vector.broadcast %cst_17 : f32 to vector<8x8x1xf32>
    %21 = arith.cmpf ogt, %4, %20 : vector<8x8x1xf32>
    %cst_18 = arith.constant 0.000000e+00 : f32
    %22 = vector.shape_cast %21 : vector<8x8x1xi1> to vector<8x8x1xi1>
    %23 = vector.broadcast %22 : vector<8x8x1xi1> to vector<8x8x32xi1>
    %24 = vector.broadcast %cst_18 : f32 to vector<8x8x32xf32>
    %25 = arith.select %23, %19, %24 : vector<8x8x32xi1>, vector<8x8x32xf32>
    %cst_19 = arith.constant dense<0.000000e+00> : vector<8x32xf32>
    %26 = vector.multi_reduction <add>, %25, %cst_19 [1] : vector<8x8x32xf32> to vector<8x32xf32>
    %c0_20 = arith.constant 0 : index
    %c0_21 = arith.constant 0 : index
    %27 = vector.load %arg5[%c0_20, %c0_21] : memref<8x1xf32, #tpu.memory_space<vmem>>, vector<8x1xf32>
    %28 = vector.broadcast %27 : vector<8x1xf32> to vector<8x32xf32>
    %29 = arith.mulf %26, %28 : vector<8x32xf32>
    %c0_22 = arith.constant 0 : index
    %c0_23 = arith.constant 0 : index
    %30 = vector.load %arg4[%c0_22, %c0_23] : memref<8x16xbf16, #tpu.memory_space<vmem>>, vector<8x16xbf16>
    %c0_24 = arith.constant 0 : index
    %c0_25 = arith.constant 0 : index
    %31 = vector.load %arg7[%c0_24, %c0_25] : memref<16x32xbf16, #tpu.memory_space<vmem>>, vector<16x32xbf16>
    %cst_26 = arith.constant dense<0.000000e+00> : vector<8x32xf32>
    %32 = tpu.matmul %30, %31, %cst_26 {dimension_numbers = #tpu.dot_dimension_numbers<[1], [0], [0], [1], [0, 0, 1, 1], [], []>} : vector<8x16xbf16>, vector<16x32xbf16>, vector<8x32xf32> -> vector<8x32xf32>
    %33 = vector.broadcast %1 : vector<1x32xf32> to vector<8x32xf32>
    %34 = arith.addf %32, %33 : vector<8x32xf32>
    %cst_27 = arith.constant 0.000000e+00 : f32
    %35 = vector.broadcast %cst_27 : f32 to vector<8x32xf32>
    %36 = arith.maximumf %34, %35 : vector<8x32xf32>
    %37 = arith.truncf %29 : vector<8x32xf32> to vector<8x32xbf16>
    %c0_28 = arith.constant 0 : index
    %c0_29 = arith.constant 0 : index
    %38 = vector.load %arg8[%c0_28, %c0_29] : memref<64x32xbf16, #tpu.memory_space<vmem>>, vector<32x32xbf16>
    %cst_30 = arith.constant dense<0.000000e+00> : vector<8x32xf32>
    %39 = tpu.matmul %37, %38, %cst_30 {dimension_numbers = #tpu.dot_dimension_numbers<[1], [0], [0], [1], [0, 0, 1, 1], [], []>} : vector<8x32xbf16>, vector<32x32xbf16>, vector<8x32xf32> -> vector<8x32xf32>
    %40 = arith.truncf %36 : vector<8x32xf32> to vector<8x32xbf16>
    %c32 = arith.constant 32 : index
    %c0_31 = arith.constant 0 : index
    %41 = vector.load %arg8[%c32, %c0_31] : memref<64x32xbf16, #tpu.memory_space<vmem>>, vector<32x32xbf16>
    %cst_32 = arith.constant dense<0.000000e+00> : vector<8x32xf32>
    %42 = tpu.matmul %40, %41, %cst_32 {dimension_numbers = #tpu.dot_dimension_numbers<[1], [0], [0], [1], [0, 0, 1, 1], [], []>} : vector<8x32xbf16>, vector<32x32xbf16>, vector<8x32xf32> -> vector<8x32xf32>
    %43 = arith.addf %39, %42 : vector<8x32xf32>
    %44 = vector.broadcast %2 : vector<1x32xf32> to vector<8x32xf32>
    %45 = arith.addf %43, %44 : vector<8x32xf32>
    %cst_33 = arith.constant 0.000000e+00 : f32
    %46 = vector.broadcast %cst_33 : f32 to vector<8x32xf32>
    %47 = arith.maximumf %45, %46 : vector<8x32xf32>
    %c0_34 = arith.constant 0 : index
    %c0_35 = arith.constant 0 : index
    %48 = vector.load %arg9[%c0_34, %c0_35] : memref<1x32xf32, #tpu.memory_space<vmem>>, vector<1x32xf32>
    %49 = vector.broadcast %48 : vector<1x32xf32> to vector<8x32xf32>
    %50 = arith.mulf %47, %49 : vector<8x32xf32>
    %cst_36 = arith.constant dense<0.000000e+00> : vector<8xf32>
    %51 = vector.multi_reduction <add>, %50, %cst_36 [1] : vector<8x32xf32> to vector<8xf32>
    %52 = vector.shape_cast %51 : vector<8xf32> to vector<8x1xf32>
    %53 = vector.broadcast %3 : vector<1x1xf32> to vector<8x1xf32>
    %54 = arith.addf %52, %53 : vector<8x1xf32>
    %c0_37 = arith.constant 0 : index
    %c0_38 = arith.constant 0 : index
    %55 = vector.load %arg11[%c0_37, %c0_38] : memref<8x1xf32, #tpu.memory_space<vmem>>, vector<8x1xf32>
    tpu.vector_store %arg11[%c0_37, %c0_38], %54 {strides = array<i32>} : memref<8x1xf32, #tpu.memory_space<vmem>>, vector<8x1xf32>,
    return
  }
  func.func @transform_0(%arg0: i32) -> (i32, i32, i32) {
    %c0_i32 = arith.constant 0 : i32
    %c0_i32_0 = arith.constant 0 : i32
    %c0_i32_1 = arith.constant 0 : i32
    return %arg0, %c0_i32, %c0_i32_0 : i32, i32, i32
  }
  func.func @transform_1(%arg0: i32) -> (i32, i32, i32) {
    %c0_i32 = arith.constant 0 : i32
    %c0_i32_0 = arith.constant 0 : i32
    %c0_i32_1 = arith.constant 0 : i32
    return %arg0, %c0_i32, %c0_i32_0 : i32, i32, i32
  }
  func.func @transform_2(%arg0: i32) -> (i32, i32, i32) {
    %c0_i32 = arith.constant 0 : i32
    %c0_i32_0 = arith.constant 0 : i32
    %c0_i32_1 = arith.constant 0 : i32
    return %arg0, %c0_i32, %c0_i32_0 : i32, i32, i32
  }
  func.func @transform_3(%arg0: i32) -> (i32, i32) {
    %c0_i32 = arith.constant 0 : i32
    %c0_i32_0 = arith.constant 0 : i32
    return %arg0, %c0_i32 : i32, i32
  }
  func.func @transform_4(%arg0: i32) -> (i32, i32) {
    %c0_i32 = arith.constant 0 : i32
    %c0_i32_0 = arith.constant 0 : i32
    return %arg0, %c0_i32 : i32, i32
  }
  func.func @transform_5(%arg0: i32) -> (i32, i32) {
    %c0_i32 = arith.constant 0 : i32
    %c0_i32_0 = arith.constant 0 : i32
    %c0_i32_1 = arith.constant 0 : i32
    return %c0_i32, %c0_i32_0 : i32, i32
  }
  func.func @transform_6(%arg0: i32) -> (i32, i32) {
    %c0_i32 = arith.constant 0 : i32
    %c0_i32_0 = arith.constant 0 : i32
    %c0_i32_1 = arith.constant 0 : i32
    return %c0_i32, %c0_i32_0 : i32, i32
  }
  func.func @transform_7(%arg0: i32) -> (i32, i32) {
    %c0_i32 = arith.constant 0 : i32
    %c0_i32_0 = arith.constant 0 : i32
    %c0_i32_1 = arith.constant 0 : i32
    return %c0_i32, %c0_i32_0 : i32, i32
  }
  func.func @transform_8(%arg0: i32) -> (i32, i32) {
    %c0_i32 = arith.constant 0 : i32
    %c0_i32_0 = arith.constant 0 : i32
    %c0_i32_1 = arith.constant 0 : i32
    return %c0_i32, %c0_i32_0 : i32, i32
  }
  func.func @transform_9(%arg0: i32) -> (i32, i32) {
    %c0_i32 = arith.constant 0 : i32
    %c0_i32_0 = arith.constant 0 : i32
    %c0_i32_1 = arith.constant 0 : i32
    return %c0_i32, %c0_i32_0 : i32, i32
  }
  func.func @transform_10(%arg0: i32) -> (i32, i32) {
    %c0_i32 = arith.constant 0 : i32
    %c0_i32_0 = arith.constant 0 : i32
    return %arg0, %c0_i32 : i32, i32
  }
}

</mosaic_0001>

<bundles_post_ra>
// kernel: tpu_custom_call.1
= control target key start
LH: loop header
LB: loop body
LE: loop exit
PB: predicated region body
PF: predicated region fallthrough
CT: control target
= control target key end

     0   :  { %s1724_s13 = smov 0   ;;  %s1943_s0 = inlined_call_operand.vmem [shape: bf16[16,8,4], index: 0, kind: input, shape index: {}]   ;;  %s1944_s1 = inlined_call_operand.vmem [shape: bf16[16,8,8], index: 1, kind: input, shape index: {}]   ;;  %s1945_s2 = inlined_call_operand.vmem [shape: f32[16,8,1], index: 2, kind: input, shape index: {}]   ;;  %s1946_s3 = inlined_call_operand.vmem [shape: bf16[16,16], index: 3, kind: input, shape index: {}]   ;;  %s1947_s4 = inlined_call_operand.vmem [shape: f32[16,1], index: 4, kind: input, shape index: {}]   ;;  %s1948_s5 = inlined_call_operand.vmem [shape: bf16[4,32], index: 5, kind: input, shape index: {}]   ;;  %s1949_s6 = inlined_call_operand.vmem [shape: bf16[16,32], index: 6, kind: input, shape index: {}]   ;;  %s1950_s7 = inlined_call_operand.vmem [shape: bf16[64,32], index: 7, kind: input, shape index: {}]   ;;  %s1951_s8 = inlined_call_operand.vmem [shape: f32[1,32], index: 8, kind: input, shape index: {}]   ;;  %s1952_s9 = inlined_call_operand.vmem [shape: f32[1,512], index: 9, kind: input, shape index: {}]   ;;  %s1953_s10 = inlined_call_operand.vmem [shape: f32[16,1], index: 10, kind: output, shape index: {}]  }
   0x1 LB: > { %s1730_s14 = sadd.s32 4294967295, %s1664_s13   ;;  %p1493_p0 = scmp.ge.s32.totalorder %s1664_s13, 1  ;;  %s1664_s13 = sphi %s1724_s13, %s20_s13  }
   0x2   : > { %p353_p1 = scmp.lt.s32.totalorder %s1664_s13, 3 }
   0x4   : > { %p354_p2 = pnand %p1493_p0, %p353_p1 }
   0x5   : > { %s1494_s15 = sshll.u32 (!%p354_p2), %s1730_s14, 3  ;;  %v1666_v0 = vmov (!%p354_p2), 0.0   ;;  %vm1667_vm0 = vmmov (!%p354_p2), 0   ;;  %v1668_v1 = vmov (!%p354_p2), 0   ;;  %vm471_vm1 = vcmask (!%p354_p2), 1043456   ;;  %p426_p4 = scmp.lt.s32.totalorder (!%p354_p2), %s1730_s14, 1 }
   0x6   : > { %357 = sbr.rel (%p354_p2) target bundleno = 876 (0x36c), region = 60  ;;  %1559 = vmatprep.subr.bf16.mxu0 (!%p354_p2), %v1666_v0  ;;  %1565 = vmatprep.subr.bf16.mxu1 (!%p354_p2), %v1666_v0  ;;  %p409_p3 = scmp.lt.s32.totalorder (!%p354_p2), %s1494_s15, 15  ;;  %vm467_vm2 = vcmask (!%p354_p2), 64512   ;;  %v889_v43 = vld [vmem:[%s1948_s5] sm:$0x3] (!%p354_p2)  ;;  %vm903_vm11 = vcmask (!%p354_p2), 1041408  }
   0x7   : > { %1561 = vmatprep.mubr.msk.bf16.mxu0 (!%p354_p2), %vm1667_vm0, %v1666_v0  ;;  %1567 = vmatprep.mubr.msk.bf16.mxu1 (!%p354_p2), %vm1667_vm0, %v1666_v0  ;;  %v905_v44 = vsel (!%p354_p2), %vm903_vm11, %v889_v43, 0  ;;  %v1653_v45 = vld [vmem:[%s1949_s6] sm:$0xff] (!%p354_p2)   ;;  %vm1150_vm12 = vcmask (!%p354_p2), 130048   ;;  %vm890_vm13 = vcmask (!%p354_p2), 31744   ;;  %vm1050_vm14 = vcmask (!%p354_p2), 261120  }
   0x8   : > { %1651 = vset.pattern.permute.xlu0 (!%p354_p2), %v1668_v1  ;;  %1652 = vset.pattern.permute.xlu1 (!%p354_p2), %v1668_v1 }
   0xd   : > { %s1955_s15 = smov (!%p409_p3, %s1494_s15), 15  ;;  %s1957_s14 = smov (!%p426_p4, %s1730_s14), 1 }
   0xe   : > { %s1495_s16 = sshll.u32 %s1955_s15, 2  ;;  %s1499_s17 = sshll.u32 %s1955_s15, 3 }
   0xf   : > { %s1746_s20 = scalar_lea.vmem %s1943_s0, %s1495_s16  ;;  %s1751_s23 = scalar_lea.vmem %s1944_s1, %s1495_s16 }
  0x10   : > { %v459_v2 = vld [vmem:[%s1746_s20] sm:$0xf]  ;;  %v460_v3 = vld [vmem:[%s1746_s20 + $0x4] sm:$0xf]  ;;  %s1758_s26 = scalar_lea.vmem %s1945_s2, %s1499_s17  ;;  %v461_v7 = vld [vmem:[%s1746_s20 + $0x8] sm:$0xf] }
  0x11   : > { %v473_v4 = vsel %vm471_vm1, %v459_v2, 0  ;;  %v519_v5 = vsel %vm471_vm1, %v460_v3, 0  ;;  %v451_v6 = vld [vmem:[%s1751_s23] sm:$0xf]  ;;  %v452_v8 = vld [vmem:[%s1751_s23 + $0x4] sm:$0xf] }
  0x12   : > { %1560 = vmatpush3.bf16.msra.mxu0 %v473_v4  ;;  %1566 = vmatpush3.bf16.msra.mxu1 %v519_v5  ;;  %v462_v9 = vld [vmem:[%s1746_s20 + $0xc] sm:$0xf]  ;;  %v1767_v10 = vld [vmem:[%s1758_s26] sm:$0xff]  ;;  %v565_v11 = vsel %vm471_vm1, %v461_v7, 0  ;;  %v445_v14 = vld [vmem:[%s1758_s26 + $0x10] sm:$0xff]  ;;  %s1501_s27 = sshll.u32 %s1957_s14, 3 }
  0x13   : > { %1571 = vmatprep.subr.bf16.mxu0 %v1666_v0  ;;  %1577 = vmatprep.subr.bf16.mxu1 %v1666_v0  ;;  %v611_v12 = vsel %vm471_vm1, %v462_v9, 0  ;;  %v444_v13 = vld [vmem:[%s1758_s26 + $0x8] sm:$0xff]  ;;  %v463_v15 = vld [vmem:[%s1746_s20 + $0x10] sm:$0xf]  ;;  %v464_v16 = vld [vmem:[%s1746_s20 + $0x14] sm:$0xf]  ;;  %s433_s30 = scalar_lea.vmem %s1947_s4, %s1501_s27  ;;  %s437_s24 = scalar_lea.vmem %s1953_s10, %s1501_s27 }
  0x14   : > { %839 = vperm.xlu0 %1651, %v1767_v10   ;;  %849 = vperm.xlu1 %1652, %v445_v14   ;;  %v453_v17 = vld [vmem:[%s1751_s23 + $0x8] sm:$0xf]  ;;  %v454_v18 = vld [vmem:[%s1751_s23 + $0xc] sm:$0xf]  ;;  %v657_v19 = vsel %vm471_vm1, %v463_v15, 0  ;;  %v703_v20 = vsel %vm471_vm1, %v464_v16, 0 }
  0x15   : > { %1562 = vmatmul.mubr.msk.bf16.vlgmr.msra.gmra.mrb[0].mxu0 %vm467_vm2, %v451_v6  ;;  %1568 = vmatmul.mubr.msk.bf16.vlgmr.msra.gmra.mrb[0].mxu1 %vm467_vm2, %v452_v8  ;;  %v447_v21 = vld [vmem:[%s1758_s26 + $0x20] sm:$0xff]  ;;  %v446_v22 = vld [vmem:[%s1758_s26 + $0x18] sm:$0xff]  ;;  %v455_v25 = vld [vmem:[%s1751_s23 + $0x10] sm:$0xf]  ;;  %vm995_vm3 = vcmp.gt.f32.partialorder %v444_v13, 0.0  ;;  %vm994_vm4 = vcmp.gt.f32.partialorder %v1767_v10, 0.0 }
  0x16   : > { %1572 = vmatpush3.bf16.msra.mxu0 %v565_v11  ;;  %1578 = vmatpush3.bf16.msra.mxu1 %v611_v12  ;;  %v465_v23 = vld [vmem:[%s1746_s20 + $0x18] sm:$0xf]  ;;  %v466_v24 = vld [vmem:[%s1746_s20 + $0x1c] sm:$0xf]  ;;  %v456_v26 = vld [vmem:[%s1751_s23 + $0x14] sm:$0xf] }
  0x17   : > { %1573 = vmatprep.mubr.msk.bf16.mxu0 %vm1667_vm0, %v1666_v0  ;;  %1579 = vmatprep.mubr.msk.bf16.mxu1 %vm1667_vm0, %v1666_v0  ;;  %v749_v27 = vsel %vm471_vm1, %v465_v23, 0  ;;  %v795_v28 = vsel %vm471_vm1, %v466_v24, 0  ;;  %v449_v29 = vld [vmem:[%s1758_s26 + $0x30] sm:$0xff]  ;;  %v448_v30 = vld [vmem:[%s1758_s26 + $0x28] sm:$0xff]  ;;  %v1003_v31 = vsel %vm995_vm3, 1, %v1668_v1  ;;  %v450_v32 = vld [vmem:[%s1758_s26 + $0x38] sm:$0xff] }
  0x18   : > { %1583 = vmatprep.subr.bf16.mxu0 %v1666_v0  ;;  %1589 = vmatprep.subr.bf16.mxu1 %v1666_v0  ;;  %v457_v33 = vld [vmem:[%s1751_s23 + $0x18] sm:$0xf]  ;;  %v458_v34 = vld [vmem:[%s1751_s23 + $0x1c] sm:$0xf]  ;;  %vm996_vm5 = vcmp.gt.f32.partialorder %v445_v14, 0.0  ;;  %v1002_v35 = vsel %vm994_vm4, 1, %v1668_v1 }
  0x19   : > { %844 = vperm.xlu0 %1651, %v444_v13   ;;  %854 = vperm.xlu1 %1652, %v446_v22   ;;  %v1004_v36 = vsel %vm996_vm5, 1, %v1668_v1  ;;  %vm998_vm6 = vcmp.gt.f32.partialorder %v447_v21, 0.0  ;;  %vm997_vm7 = vcmp.gt.f32.partialorder %v446_v22, 0.0  ;;  %vm1000_vm8 = vcmp.gt.f32.partialorder %v449_v29, 0.0  ;;  %v1107_v41 = vld [vmem:[%s433_s30] sm:$0xff]  ;;  %s1500_s17 = sshll.u32 %s1957_s14, 2 }
  0x1a   : > { %v1006_v37 = vsel %vm998_vm6, 1, %v1668_v1  ;;  %v1005_v38 = vsel %vm997_vm7, 1, %v1668_v1  ;;  %vm999_vm9 = vcmp.gt.f32.partialorder %v448_v30, 0.0  ;;  %v1008_v39 = vsel %vm1000_vm8, 1, %v1668_v1  ;;  %s429_s20 = scalar_lea.vmem %s1946_s3, %s1500_s17 }
  0x1b   : > { %v1007_v40 = vsel %vm999_vm9, 1, %v1668_v1  ;;  %vm1001_vm10 = vcmp.gt.f32.partialorder %v450_v32, 0.0  ;;  %v1135_v46 = vld [vmem:[%s429_s20] sm:$0xf]  ;;  %vm1284_vm7 = vcmask 1041409   ;;  %vm1287_vm8 = vcmask 1042434  }
  0x1c   : > { %v1009_v42 = vsel %vm1001_vm10, 1, %v1668_v1  ;;  %vm1290_vm9 = vcmask 1043459   ;;  %vm1293_vm10 = vcmask 1044484  }
  0x1d   : > { %1574 = vmatmul.mubr.msk.bf16.vlgmr.msra.gmra.mrb[4].mxu0 %vm467_vm2, %v453_v17  ;;  %1580 = vmatmul.mubr.msk.bf16.vlgmr.msra.gmra.mrb[4].mxu1 %vm467_vm2, %v454_v18 }
  0x1e   : > { %1584 = vmatpush3.bf16.msra.mxu0 %v657_v19  ;;  %1590 = vmatpush3.bf16.msra.mxu1 %v703_v20 }
  0x1f   : > { %1585 = vmatprep.mubr.msk.bf16.mxu0 %vm1667_vm0, %v1666_v0  ;;  %1591 = vmatprep.mubr.msk.bf16.mxu1 %vm1667_vm0, %v1666_v0 }
  0x20   : > { %1595 = vmatprep.subr.bf16.mxu0 %v1666_v0  ;;  %1601 = vmatprep.subr.bf16.mxu1 %v1666_v0 }
  0x21   : > { %859 = vperm.xlu0 %1651, %v447_v21   ;;  %864 = vperm.xlu1 %1652, %v448_v30  }
  0x25   : > { %1586 = vmatmul.mubr.msk.bf16.vlgmr.msra.gmra.mrb[8].mxu0 %vm467_vm2, %v455_v25  ;;  %1592 = vmatmul.mubr.msk.bf16.vlgmr.msra.gmra.mrb[8].mxu1 %vm467_vm2, %v456_v26 }
  0x26   : > { %1596 = vmatpush3.bf16.msra.mxu0 %v749_v27  ;;  %1602 = vmatpush3.bf16.msra.mxu1 %v795_v28 }
  0x27   : > { %1597 = vmatprep.mubr.msk.bf16.mxu0 %vm1667_vm0, %v1666_v0  ;;  %1603 = vmatprep.mubr.msk.bf16.mxu1 %vm1667_vm0, %v1666_v0 }
  0x28   : > { %869 = vperm.xlu0 %1651, %v449_v29   ;;  %1617 = vmatprep.subr.bf16.mxu1 %v1666_v0 }
  0x29   : > { %874 = vperm.xlu1 %1652, %v450_v32   ;;  %1639 = vmatprep.subr.msk.bf16.mxu0 %vm903_vm11, %v889_v43  ;;  %v1657_v43 = vld [vmem:[%s1950_s7 + $0x18] sm:$0xff]   ;;  %vm1296_vm11 = vcmask 1045509  }
  0x2c   : > { %1014 = vperm.xlu0 %1651, %v1003_v31  }
  0x2d   : > { %1598 = vmatmul.mubr.msk.bf16.vlgmr.msra.gmra.mrb[12].mxu0 %vm467_vm2, %v457_v33  ;;  %1604 = vmatmul.mubr.msk.bf16.vlgmr.msra.gmra.mrb[12].mxu1 %vm467_vm2, %v458_v34 }
  0x2e   : > { %1619 = vmatprep.mubr.msk.bf16.mxu1 %vm1667_vm0, %v1666_v0  ;;  %1017 = vperm.xlu1 %1652, %v1004_v36   ;;  %v1655_v36 = vld [vmem:[%s1950_s7 + $0x10] sm:$0xff]  }
  0x2f   : > { %1608 = vmatpush3.bf16.msra.mxu0 %v905_v44  ;;  %1618 = vmatpush3.bf16.msra.mxu1 %v1653_v45 }
  0x30   : > { %1011 = vperm.xlu0 %1651, %v1002_v35   ;;  %1631 = vmatprep.subr.bf16.mxu0 %v1666_v0 }
  0x31   : > { %1623 = vmatprep.subr.bf16.mxu1 %v1666_v0 }
  0x32   : > { %1020 = vperm.xlu1 %1652, %v1005_v38  }
  0x34   : > { %1023 = vperm.xlu0 %1651, %v1006_v37   ;;  %v1516_v37 = vld [vmem:[%s1952_s9 + $0x1] ss:$0 sm:$0xff] }
  0x35   : > { %1620 = vmatmul.mubr.msk.bf16.vlgmr.msra.gmra.mrb[16].mxu1 %vm1150_vm12, %v1135_v46  ;;  %vm1299_vm12 = vcmask 1046534  }
  0x36   : > { %1026 = vperm.xlu1 %1652, %v1007_v40   ;;  %1627 = vmatprep.mubr.msk.bf16.mxu1 %vm1667_vm0, %v1666_v0 }
  0x37   : > { %1624 = vmatpush3.bf16.msra.mxu1 %v1655_v36 }
  0x38   : > { %1029 = vperm.xlu0 %1651, %v1008_v39   ;;  %v1654_v39 = vld [vmem:[%s1950_s7] sm:$0xff]   ;;  %1625 = vmatprep.subr.bf16.mxu1 %v1666_v0 }
  0x3a   : > { %1032 = vperm.xlu1 %1652, %v1009_v42  }
  0x3b   : > { %1626 = vmatpush3.bf16.msra.mxu1 %v1657_v43 }
  0x3c   : > { %1110 = vperm.xlu0 %1651, %v1107_v41  }
  0x93   : > { %v840_v47 = vpop.permute.xlu0 %839  ;;  %v850_v49 = vpop.permute.xlu1 %849 }
  0x98   : > { %v845_v48 = vpop.permute.xlu0 %844  ;;  %v855_v61 = vpop.permute.xlu1 %854 }
  0xa0   : > { %v860_v10 = vpop.permute.xlu0 %859  ;;  %v865_v11 = vpop.permute.xlu1 %864 }
  0xa7   : > { %v870_v23 = vpop.permute.xlu0 %869 }
  0xa8   : > { %v875_v24 = vpop.permute.xlu1 %874 }
  0xe8   : > { %v509_v50 = vpop.f32.mrb[0].mxu0  ;;  %v555_v51 = vpop.f32.mrb[0].mxu1 }
  0xe9   : > { %v877_v52 = vmul.f32 %v840_v47, %v509_v50  ;;  %v878_v53 = vmul.f32 %v845_v48, %v555_v51  ;;  %v1563_v54 = vpop.f32.mrb[1].mxu0  ;;  %v1569_v55 = vpop.f32.mrb[1].mxu1  ;;  %v1656_v47 = vld [vmem:[%s1950_s7 + $0x8] sm:$0xff]   ;;  %v1882_v51 = vld [vmem:[%s1952_s9] ss:$0 sm:$0xff] }
  0xea   : > { %v512_v56 = vpop.f32.mrb[2].mxu0  ;;  %v558_v57 = vpop.f32.mrb[2].mxu1 }
  0xeb   : > { %v885_v58 = vpack.c.bf16 %v878_v53, %v877_v52  ;;  %v1564_v59 = vpop.f32.mrb[3].mxu0  ;;  %v1570_v60 = vpop.f32.mrb[3].mxu1 }
  0xec   : > { %v1015_v48 = vpop.permute.xlu0 %1014 }
  0xed   : > { %1609 = vmatprep.mubr.msk.bf16.mxu0 %vm890_vm13, %v885_v58  ;;  %vm1035_vm2 = vcmp.eq.s32.totalorder %v1015_v48, 1 }
  0xf0   : > { %v601_v62 = vpop.f32.mrb[4].mxu0  ;;  %v647_v63 = vpop.f32.mrb[4].mxu1 }
  0xf1   : > { %v879_v1 = vmul.f32 %v850_v49, %v601_v62  ;;  %v880_v2 = vmul.f32 %v855_v61, %v647_v63  ;;  %v1575_v3 = vpop.f32.mrb[5].mxu0  ;;  %v1581_v4 = vpop.f32.mrb[5].mxu1 }
  0xf2   : > { %v604_v5 = vpop.f32.mrb[6].mxu0  ;;  %v650_v6 = vpop.f32.mrb[6].mxu1 }
  0xf3   : > { %v886_v7 = vpack.c.bf16 %v880_v2, %v879_v1  ;;  %v1576_v8 = vpop.f32.mrb[7].mxu0  ;;  %v1582_v9 = vpop.f32.mrb[7].mxu1 }
  0xf4   : > { %v1018_v49 = vpop.permute.xlu1 %1017  ;;  %v1012_v50 = vpop.permute.xlu0 %1011 }
  0xf5   : > { %1610 = vmatmul.mubr.msk.bf16.vlgmr.msra.gmra.mrb[16].mxu0 %vm890_vm13, %v886_v7  ;;  %vm1036_vm15 = vcmp.eq.s32.totalorder %v1018_v49, 1 }
  0xf6   : > { %1632 = vmatpush3.bf16.msra.mxu0 %v1654_v39 }
  0xf7   : > { %1633 = vmatprep.subr.bf16.mxu0 %v1666_v0 }
  0xf8   : > { %v693_v12 = vpop.f32.mrb[8].mxu0  ;;  %v739_v13 = vpop.f32.mrb[8].mxu1 }
  0xf9   : > { %v881_v14 = vmul.f32 %v860_v10, %v693_v12  ;;  %v882_v15 = vmul.f32 %v865_v11, %v739_v13  ;;  %v1587_v16 = vpop.f32.mrb[9].mxu0  ;;  %v1593_v17 = vpop.f32.mrb[9].mxu1 }
  0xfa   : > { %v696_v18 = vpop.f32.mrb[10].mxu0  ;;  %v742_v19 = vpop.f32.mrb[10].mxu1  ;;  %1634 = vmatpush3.bf16.msra.mxu0 %v1656_v47 }
  0xfb   : > { %v887_v20 = vpack.c.bf16 %v882_v15, %v881_v14  ;;  %v1588_v21 = vpop.f32.mrb[11].mxu0  ;;  %v1594_v22 = vpop.f32.mrb[11].mxu1 }
  0xfc   : > { %v1885_v55 = vpop.permute.xlu0 %1023 }
  0xfd   : > { %1613 = vmatprep.mubr.msk.bf16.mxu0 %vm890_vm13, %v887_v20  ;;  %vm1038_vm3 = vcmp.eq.s32.totalorder %v1885_v55, 1 }
 0x100   : > { %v785_v25 = vpop.f32.mrb[12].mxu0  ;;  %v831_v26 = vpop.f32.mrb[12].mxu1 }
 0x101   : > { %v883_v27 = vmul.f32 %v870_v23, %v785_v25  ;;  %v884_v28 = vmul.f32 %v875_v24, %v831_v26  ;;  %v1599_v29 = vpop.f32.mrb[13].mxu0  ;;  %v1605_v30 = vpop.f32.mrb[13].mxu1 }
 0x102   : > { %v788_v31 = vpop.f32.mrb[14].mxu0  ;;  %v834_v32 = vpop.f32.mrb[14].mxu1 }
 0x103   : > { %v888_v33 = vpack.c.bf16 %v884_v28, %v883_v27  ;;  %v1600_v34 = vpop.f32.mrb[15].mxu0  ;;  %v1606_v35 = vpop.f32.mrb[15].mxu1 }
 0x104   : > { %v1030_v9 = vpop.permute.xlu0 %1029 }
 0x105   : > { %1614 = vmatmul.mubr.msk.bf16.gmra.mrb[20].mxu0 %vm890_vm13, %v888_v33  ;;  %vm1040_vm4 = vcmp.eq.s32.totalorder %v1030_v9, 1  ;;  %vm1302_vm13 = vcmask 1047559  }
 0x106   : > { %1635 = vmatprep.mubr.msk.bf16.mxu0 %vm1667_vm0, %v1666_v0  ;;  %v1021_v0 = vpop.permute.xlu1 %1020  ;;  %vm1034_vm0 = vcmp.eq.s32.totalorder %v1012_v50, 1 }
 0x107   : > { %vm1037_vm1 = vcmp.eq.s32.totalorder %v1021_v0, 1 }
 0x108   : > { %v1188_v38 = vpop.f32.mrb[16].mxu1  ;;  %v1896_v25 = vpop.permute.xlu0 %1110 }
 0x109   : > { %v1189_v40 = vadd.f32 %v1516_v37, %v1188_v38  ;;  %v1621_v41 = vpop.f32.mrb[17].mxu1  ;;  %v1113_v34 = vrot.slane %v1896_v25, 2  ;;  %v1114_v39 = vrot.slane %v1896_v25, 3  ;;  %v1112_v50 = vrot.slane %v1896_v25, 1 }
 0x10a   : > { %v1191_v42 = vpop.f32.mrb[18].mxu1  ;;  %v1891_v5 = vpop.permute.xlu1 %1026 }
 0x10b   : > { %v1194_v44 = vmax.f32 %v1189_v40, 0.0  ;;  %v1622_v45 = vpop.f32.mrb[19].mxu1  ;;  %vm1039_vm6 = vcmp.eq.s32.totalorder %v1891_v5, 1 }
 0x10d   : > { %v1207_v46 = vpack.c.bf16 %v1194_v44, %v1194_v44 }
 0x10e   : > { %v1033_v22 = vpop.permute.xlu1 %1032 }
 0x10f   : > { %1628 = vmatmul.mubr.msk.bf16.vlgmr.msra.gmra.mrb[20].mxu1 %vm1050_vm14, %v1207_v46  ;;  %vm1041_vm5 = vcmp.eq.s32.totalorder %v1033_v22, 1 }
 0x1c8   : > { %v1611_v52 = vpop.f32.mrb[16].mxu0 }
 0x1c9   : > { %v980_v53 = vadd.f32 %v1611_v52, %v1882_v51  ;;  %v941_v54 = vpop.f32.mrb[17].mxu0 }
 0x1ca   : > { %v978_v56 = vadd.f32 %v1882_v51, %v941_v54  ;;  %v1612_v57 = vpop.f32.mrb[18].mxu0 }
 0x1cb   : > { %v988_v58 = vmax.f32 %v980_v53, 0.0  ;;  %v981_v59 = vadd.f32 %v1612_v57, %v1882_v51  ;;  %v944_v60 = vpop.f32.mrb[19].mxu0 }
 0x1cc   : > { %v986_v61 = vmax.f32 %v978_v56, 0.0  ;;  %v979_v62 = vadd.f32 %v1882_v51, %v944_v60 }
 0x1cd   : > { %v1044_v63 = vsel %vm1036_vm15, %v988_v58, 0.0  ;;  %v989_v1 = vmax.f32 %v981_v59, 0.0  ;;  %vm1386_vm15 = vcmask 7168  }
 0x1ce   : > { %v1065_v2 = vsel %vm1050_vm14, %v1044_v63, 0.0  ;;  %v1042_v3 = vsel %vm1034_vm0, %v986_v61, 0.0  ;;  %v987_v4 = vmax.f32 %v979_v62, 0.0 }
 0x1cf   : > { %v1066_v6 = vrot.slane %v1065_v2, 4  ;;  %v1051_v7 = vsel %vm1050_vm14, %v1042_v3, 0.0  ;;  %v1045_v8 = vsel %vm1037_vm1, %v989_v1, 0.0 }
 0x1d0   : > { %v1052_v10 = vrot.slane %v1051_v7, 4  ;;  %v1072_v11 = vsel %vm1050_vm14, %v1045_v8, 0.0  ;;  %v1043_v12 = vsel %vm1035_vm2, %v987_v4, 0.0 }
 0x1d1   : > { %v1067_v13 = vadd.f32 %v1066_v6, %v1065_v2  ;;  %v1073_v14 = vrot.slane %v1072_v11, 4  ;;  %v1058_v15 = vsel %vm1050_vm14, %v1043_v12, 0.0 }
 0x1d2   : > { %v1053_v16 = vadd.f32 %v1052_v10, %v1051_v7  ;;  %v1059_v17 = vrot.slane %v1058_v15, 4 }
 0x1d3   : > { %v1068_v18 = vrot.slane %v1067_v13, 2  ;;  %v1074_v19 = vadd.f32 %v1073_v14, %v1072_v11 }
 0x1d4   : > { %v1054_v20 = vrot.slane %v1053_v16, 2  ;;  %v1060_v21 = vadd.f32 %v1059_v17, %v1058_v15 }
 0x1d5   : > { %v1069_v23 = vadd.f32 %v1068_v18, %v1067_v13  ;;  %v1075_v24 = vrot.slane %v1074_v19, 2 }
 0x1d6   : > { %v1055_v26 = vadd.f32 %v1054_v20, %v1053_v16  ;;  %v1061_v27 = vrot.slane %v1060_v21, 2 }
 0x1d7   : > { %v1070_v28 = vrot.slane %v1069_v23, 1  ;;  %v1076_v29 = vadd.f32 %v1075_v24, %v1074_v19 }
 0x1d8   : > { %v1056_v30 = vrot.slane %v1055_v26, 1  ;;  %v1062_v31 = vadd.f32 %v1061_v27, %v1060_v21  ;;  %v1615_v32 = vpop.f32.mrb[20].mxu0 }
 0x1d9   : > { %v1071_v33 = vadd.f32 %v1070_v28, %v1069_v23  ;;  %v1077_v35 = vrot.slane %v1076_v29, 1  ;;  %v984_v36 = vadd.f32 %v1615_v32, %v1882_v51  ;;  %v957_v37 = vpop.f32.mrb[21].mxu0 }
 0x1da   : > { %v1057_v38 = vadd.f32 %v1056_v30, %v1055_v26  ;;  %v1063_v40 = vrot.slane %v1062_v31, 1  ;;  %v982_v41 = vadd.f32 %v1882_v51, %v957_v37  ;;  %v1616_v42 = vpop.f32.mrb[22].mxu0  ;;  %v1117_v37 = vrot.slane %v1896_v25, 6 }
 0x1db   : > { %v1129_v43 = vmul.f32 %v1113_v34, %v1071_v33  ;;  %v1078_v44 = vadd.f32 %v1077_v35, %v1076_v29  ;;  %v992_v45 = vmax.f32 %v984_v36, 0.0  ;;  %v985_v46 = vadd.f32 %v1616_v42, %v1882_v51  ;;  %v960_v47 = vpop.f32.mrb[23].mxu0 }
 0x1dc   : > { %v1127_v48 = vmul.f32 %v1896_v25, %v1057_v38  ;;  %v1064_v49 = vadd.f32 %v1063_v40, %v1062_v31  ;;  %v990_v52 = vmax.f32 %v982_v41, 0.0  ;;  %v983_v60 = vadd.f32 %v1882_v51, %v960_v47 }
 0x1dd   : > { %v1197_v0 = vpack.c.bf16 %v1129_v43, %v1129_v43  ;;  %v1130_v53 = vmul.f32 %v1114_v39, %v1078_v44  ;;  %v1048_v54 = vsel %vm1040_vm4, %v992_v45, 0.0  ;;  %v993_v56 = vmax.f32 %v985_v46, 0.0 }
 0x1de   : > { %v1128_v57 = vmul.f32 %v1112_v50, %v1064_v49  ;;  %v1093_v58 = vsel %vm1050_vm14, %v1048_v54, 0.0  ;;  %v1046_v59 = vsel %vm1038_vm3, %v990_v52, 0.0  ;;  %v1195_v61 = vpack.c.bf16 %v1127_v48, %v1127_v48 }
 0x1df   : > { %v1198_v62 = vpack.c.bf16 %v1130_v53, %v1130_v53  ;;  %v1094_v63 = vrot.slane %v1093_v58, 4  ;;  %v1079_v1 = vsel %vm1050_vm14, %v1046_v59, 0.0  ;;  %v1049_v4 = vsel %vm1041_vm5, %v993_v56, 0.0 }
 0x1e0   : > { %v1196_v2 = vpack.c.bf16 %v1128_v57, %v1128_v57  ;;  %v1080_v3 = vrot.slane %v1079_v1, 4  ;;  %v1277_v6 = vunpack.c.l.b16 %v1197_v0  ;;  %v1100_v9 = vsel %vm1050_vm14, %v1049_v4, 0.0 }
 0x1e1   : > { %v1278_v7 = vunpack.c.l.b16 %v1198_v62  ;;  %v1095_v8 = vadd.f32 %v1094_v63, %v1093_v58  ;;  %v1101_v11 = vrot.slane %v1100_v9, 4  ;;  %v991_v12 = vmax.f32 %v983_v60, 0.0 }
 0x1e2   : > { %v1276_v10 = vunpack.c.l.b16 %v1196_v2  ;;  %v1081_v55 = vadd.f32 %v1080_v3, %v1079_v1  ;;  %v1275_v51 = vunpack.c.l.b16 %v1195_v61  ;;  %v1286_v18 = vrot.slane %v1277_v6, 6  ;;  %v1261_v2 = vpop.f32.mrb[20].mxu1 }
 0x1e3   : > { %v1096_v13 = vrot.slane %v1095_v8, 2  ;;  %v1102_v16 = vadd.f32 %v1101_v11, %v1100_v9  ;;  %v1047_v17 = vsel %vm1039_vm6, %v991_v12, 0.0  ;;  %v1289_v19 = vrot.slane %v1278_v7, 5  ;;  %v1629_v3 = vpop.f32.mrb[21].mxu1  ;;  %v1525_v7 = vld [vmem:[%s1952_s9 + $0x2] ss:$0 sm:$0xff] }
 0x1e4   : > { %v1283_v14 = vrot.slane %v1276_v10, 7  ;;  %v1082_v15 = vrot.slane %v1081_v55, 2  ;;  %v1086_v21 = vsel %vm1050_vm14, %v1047_v17, 0.0  ;;  %v1115_v34 = vrot.slane %v1896_v25, 4  ;;  %v1264_v4 = vpop.f32.mrb[22].mxu1 }
 0x1e5   : > { %v1097_v20 = vadd.f32 %v1096_v13, %v1095_v8  ;;  %v1103_v24 = vrot.slane %v1102_v16, 2  ;;  %v1087_v26 = vrot.slane %v1086_v21, 4  ;;  %v1118_v40 = vrot.slane %v1896_v25, 7  ;;  %v1630_v6 = vpop.f32.mrb[23].mxu1 }
 0x1e6   : > { %v1285_v22 = vsel %vm1284_vm7, %v1283_v14, %v1275_v51  ;;  %v1083_v23 = vadd.f32 %v1082_v15, %v1081_v55  ;;  %v1116_v48 = vrot.slane %v1896_v25, 5  ;;  %v1526_v51 = vld [vmem:[%s1951_s8] ss:$0 sm:$0xff] }
 0x1e7   : > { %v1288_v27 = vsel %vm1287_vm8, %v1286_v18, %v1285_v22  ;;  %v1098_v28 = vrot.slane %v1097_v20, 1  ;;  %v1104_v31 = vadd.f32 %v1103_v24, %v1102_v16  ;;  %v1088_v32 = vadd.f32 %v1087_v26, %v1086_v21  ;;  %v1527_v16 = vld [vmem:[%s1952_s9 + $0x3] ss:$0 sm:$0xff] }
 0x1e8   : > { %v1084_v29 = vrot.slane %v1083_v23, 1  ;;  %v1291_v30 = vsel %vm1290_vm9, %v1289_v19, %v1288_v27 }
 0x1e9   : > { %v1099_v33 = vadd.f32 %v1098_v28, %v1097_v20  ;;  %v1105_v35 = vrot.slane %v1104_v31, 1  ;;  %v1089_v36 = vrot.slane %v1088_v32, 2 }
 0x1ea   : > { %v1085_v5 = vadd.f32 %v1084_v29, %v1083_v23 }
 0x1eb   : > { %v1106_v39 = vadd.f32 %v1105_v35, %v1104_v31  ;;  %v1090_v41 = vadd.f32 %v1089_v36, %v1088_v32  ;;  %v1133_v42 = vmul.f32 %v1117_v37, %v1099_v33 }
 0x1ec   : > { %v1131_v38 = vmul.f32 %v1115_v34, %v1085_v5 }
 0x1ed   : > { %v1134_v44 = vmul.f32 %v1118_v40, %v1106_v39  ;;  %v1091_v45 = vrot.slane %v1090_v41, 1  ;;  %v1201_v49 = vpack.c.bf16 %v1133_v42, %v1133_v42 }
 0x1ee   : > { %v1199_v43 = vpack.c.bf16 %v1131_v38, %v1131_v38 }
 0x1ef   : > { %v1092_v47 = vadd.f32 %v1091_v45, %v1090_v41  ;;  %v1202_v52 = vpack.c.bf16 %v1134_v44, %v1134_v44  ;;  %v1281_v56 = vunpack.c.l.b16 %v1201_v49 }
 0x1f0   : > { %v1279_v46 = vunpack.c.l.b16 %v1199_v43 }
 0x1f1   : > { %v1132_v0 = vmul.f32 %v1116_v48, %v1092_v47  ;;  %v1282_v57 = vunpack.c.l.b16 %v1202_v52  ;;  %v1298_v60 = vrot.slane %v1281_v56, 2 }
 0x1f2   : > { %v1292_v50 = vrot.slane %v1279_v46, 4 }
 0x1f3   : > { %v1200_v54 = vpack.c.bf16 %v1132_v0, %v1132_v0  ;;  %v1301_v61 = vrot.slane %v1282_v57, 1 }
 0x1f4   : > { %v1294_v53 = vsel %vm1293_vm10, %v1292_v50, %v1291_v30 }
 0x1f5   : > { %v1280_v58 = vunpack.c.l.b16 %v1200_v54 }
 0x1f7   : > { %v1295_v59 = vrot.slane %v1280_v58, 3 }
 0x1f9   : > { %v1297_v62 = vsel %vm1296_vm11, %v1295_v59, %v1294_v53 }
 0x1fa   : > { %v1300_v63 = vsel %vm1299_vm12, %v1298_v60, %v1297_v62 }
 0x1fb   : > { %v1303_v1 = vsel %vm1302_vm13, %v1301_v61, %v1300_v63 }
 0x1fc   : > { %v1304_v25 = vpack.c.b16 %v1303_v1, %v1303_v1 }
 0x1fe   : > { %1636 = vmatmul.mubr.msk.bf16.vlgmr.msra.gmra.mrb[24].mxu0 %vm1050_vm14, %v1304_v25 }
 0x2d1   : > { %v1354_v8 = vpop.f32.mrb[24].mxu0 }
 0x2d2   : > { %v1355_v9 = vadd.f32 %v1354_v8, %v1261_v2  ;;  %v1637_v10 = vpop.f32.mrb[25].mxu0 }
 0x2d3   : > { %v1357_v55 = vpop.f32.mrb[26].mxu0 }
 0x2d4   : > { %v1366_v11 = vadd.f32 %v1525_v7, %v1355_v9  ;;  %v1638_v12 = vpop.f32.mrb[27].mxu0 }
 0x2d6   : > { %v1367_v13 = vmax.f32 %v1366_v11, 0.0 }
 0x2d8   : > { %v1375_v14 = vmul.f32 %v1526_v51, %v1367_v13 }
 0x2da   : > { %v1376_v15 = vsel %vm1050_vm14, %v1375_v14, 0.0 }
 0x2db   : > { %1377 = vadd.xlane.f32.xlu1 %v1376_v15 }
 0x368   : > { %v1378_v17 = vpop.xlane.xlu1 %1377 }
 0x369   : > { %v1385_v18 = vadd.f32 %v1527_v16, %v1378_v17 }
 0x36b   : > { %1387 = vst.msk [vmem:[%s437_s24] sm:$0xff] %vm1386_vm15, %v1385_v18 }
 0x36c PF: > { %s20_s13 = sadd.s32 1, %s1664_s13  }
 0x36d   : > { %p17_p5 = scmp.ge.s32.totalorder %s20_s13, 4  }
 0x36f   :  { %19 = sbr.rel (!%p17_p5) target bundleno = 1 (0x1), region = 102 }

</bundles_post_ra>
